<compile_context>
chip_gen: v6e
topology: v6e:2x2x1
jax: 0.10.0
libtpu: 0.0.40
codegen_flags: <defaults>
</compile_context>

<pallas_src>
import functools

import jax
import jax.numpy as jnp
import numpy as np
from jax import lax
from jax.experimental import pallas as pl
from jax.experimental.pallas import tpu as pltpu


def _attention_kernel(x_ref, wqkv_ref, bqkv_ref, wp_ref, bp_ref,
                      out_ref, attn_ref,
                      qkv_ref, y_ref,
                      *, num_heads, compute_dtype, approx_reciprocal):
    """Grid = (B, H); heads iterate innermost ("arbitrary").

    x_ref    : (1, N, C)    tokens for batch b (re-fetched only when b changes)
    wqkv_ref : (C, 3C)      fused qkv weight, pre-transposed, scale folded into q cols
    bqkv_ref : (1, 3C)      fused qkv bias (scale folded into q part)
    wp_ref   : (C, C)       output-projection weight, pre-transposed
    bp_ref   : (1, C)       output-projection bias
    out_ref  : (1, N, C)    projected output for batch b (written once, at h == H-1)
    attn_ref : (1, 1, N, N) softmaxed attention map for (b, h)
    qkv_ref  : (3H, N, hd)  VMEM scratch: per-head q/k/v, filled at h == 0
    y_ref    : (H, N, hd)   VMEM scratch: per-head attn@v, consumed at h == H-1
    """
    h = pl.program_id(1)
    hd = y_ref.shape[-1]

    # ---- h == 0: ONE fused QKV projection (K = C, MXU workhorse) per batch b.
    @pl.when(h == 0)
    def _():
        xb = x_ref[0].astype(compute_dtype)                          # (N, C)
        qkv = jnp.dot(xb, wqkv_ref[...],
                      preferred_element_type=jnp.float32)            # (N, 3C) f32 acc
        qkv = (qkv + bqkv_ref[...]).astype(compute_dtype)            # single cast
        # Scatter static per-head column blocks into the (3H, N, hd) scratch so
        # later grid steps can index heads with the dynamic grid index h.
        for i in range(3 * num_heads):
            qkv_ref[i] = qkv[:, i * hd:(i + 1) * hd]

    # ---- every step: one head's scores / softmax / attn @ v. -----------------
    q = qkv_ref[h]                               # (N, hd)  (softmax scale pre-folded)
    k = qkv_ref[num_heads + h]                   # (N, hd)
    v = qkv_ref[2 * num_heads + h]               # (N, hd)

    scores = lax.dot_general(q, k, (((1,), (1,)), ((), ())),
                             preferred_element_type=jnp.float32)     # (N, N)
    scores = scores - jnp.max(scores, axis=-1, keepdims=True)
    e = jnp.exp(scores)
    denom = jnp.sum(e, axis=-1, keepdims=True)
    attn = e * pl.reciprocal(denom, approx=approx_reciprocal)
    attn_ref[0, 0] = attn.astype(attn_ref.dtype)

    y_ref[h] = jnp.dot(attn.astype(compute_dtype), v,
                       preferred_element_type=jnp.float32).astype(y_ref.dtype)

    # ---- h == H-1: ONE fused output projection (contraction K = C). ----------
    @pl.when(h == num_heads - 1)
    def _():
        yc = jnp.concatenate([y_ref[i] for i in range(num_heads)], axis=-1)  # (N, C)
        out = jnp.dot(yc, wp_ref[...], preferred_element_type=jnp.float32)
        out_ref[0] = (out + bp_ref[...]).astype(out_ref.dtype)


def attention_pallas(x, w_qkv, b_qkv, w_proj, b_proj, num_heads,
                     compute_dtype=jnp.bfloat16, attn_dtype=jnp.bfloat16,
                     approx_reciprocal=False):
    """Pallas forward of the Attention module.

    Args:
      x      : (B, N, C) float32 tokens.
      w_qkv  : (3C, C)  qkv Linear weight (PyTorch out_features x in_features).
      b_qkv  : (3C,)    qkv Linear bias.
      w_proj : (C, C)   proj Linear weight.
      b_proj : (C,)     proj Linear bias.
      compute_dtype : MXU operand dtype (bf16 default; fp32 accumulation kept).
      attn_dtype    : dtype of the returned attention map (bf16 default to
                      halve the dominant O(H*N^2) HBM writeback).
      approx_reciprocal : use the EUP approximate rcp in the softmax.
    Returns:
      (out, attn): out (B, N, C) in x.dtype, attn (B*num_heads, N, N) in attn_dtype.
    """
    B, N, C = x.shape
    assert C % num_heads == 0, "dim must be divisible by num_heads"
    hd = C // num_heads
    scale = float(hd) ** -0.5

    # Pre-transpose Linear weights so the kernel computes x @ W directly, fold
    # the softmax scale into the q columns, and pre-cast to the MXU operand
    # dtype ONCE here (instead of per grid step inside the kernel).
    scale_vec = jnp.concatenate([jnp.full((C,), scale, jnp.float32),
                                 jnp.ones((2 * C,), jnp.float32)])
    wqkv_t = (w_qkv.astype(jnp.float32).T * scale_vec[None, :]).astype(compute_dtype)  # (C, 3C)
    bqkv = (b_qkv.astype(jnp.float32) * scale_vec).reshape(1, 3 * C).astype(compute_dtype)
    wp_t = w_proj.T.astype(compute_dtype)                                               # (C, C)
    bp = b_proj.reshape(1, C).astype(compute_dtype)                                     # (1, C)

    kernel = functools.partial(_attention_kernel, num_heads=num_heads,
                               compute_dtype=compute_dtype,
                               approx_reciprocal=approx_reciprocal)

    cbytes = np.dtype(compute_dtype).itemsize
    abytes = np.dtype(attn_dtype).itemsize
    xbytes = np.dtype(x.dtype).itemsize
    # Rough per-step VMEM footprint (double-buffered I/O blocks + persistent
    # weights + scratch + in-flight f32 working values), with 2x headroom.
    est = (2 * N * C * xbytes                      # x block
           + 2 * N * C * xbytes                    # out block
           + 2 * N * N * abytes                    # attn block
           + 2 * (3 * C * C + C * C + 4 * C) * cbytes   # weights / biases
           + 4 * N * C * cbytes                    # qkv + y scratch
           + 6 * N * N * 4 + 4 * N * C * 4)        # f32 working set
    vmem_limit = int(min(max(2 * est, 32 * 1024 * 1024), 64 * 1024 * 1024))

    cost = pl.CostEstimate(
        flops=int(2 * B * N * C * (3 * C)          # qkv projection
                  + 4 * B * N * N * C              # scores + attn@v
                  + 2 * B * N * C * C),            # output projection
        transcendentals=int(B * num_heads * N * N),
        bytes_accessed=int(B * N * C * xbytes * 2
                           + (3 * C * C + C * C + 4 * C) * cbytes
                           + B * num_heads * N * N * abytes),
    )

    out, attn = pl.pallas_call(
        kernel,
        out_shape=(
            jax.ShapeDtypeStruct((B, N, C), x.dtype),
            jax.ShapeDtypeStruct((B, num_heads, N, N), attn_dtype),
        ),
        grid_spec=pltpu.PrefetchScalarGridSpec(
            num_scalar_prefetch=0,
            grid=(B, num_heads),
            in_specs=[
                pl.BlockSpec((1, N, C), lambda b, h: (b, 0, 0)),
                # Constant block index -> fetched once, VMEM-resident across
                # the whole grid (no per-step re-DMA).
                pl.BlockSpec((C, 3 * C), lambda b, h: (0, 0)),
                pl.BlockSpec((1, 3 * C), lambda b, h: (0, 0)),
                pl.BlockSpec((C, C), lambda b, h: (0, 0)),
                pl.BlockSpec((1, C), lambda b, h: (0, 0)),
            ],
            out_specs=(
                # Revisited across h (written once at h == H-1); legal because
                # the h axis is marked "arbitrary".
                pl.BlockSpec((1, N, C), lambda b, h: (b, 0, 0)),
                pl.BlockSpec((1, 1, N, N), lambda b, h: (b, h, 0, 0)),
            ),
            scratch_shapes=[
                pltpu.VMEM((3 * num_heads, N, hd), compute_dtype),   # q/k/v per head
                pltpu.VMEM((num_heads, N, hd), compute_dtype),       # attn@v per head
            ],
        ),
        compiler_params=pltpu.CompilerParams(
            dimension_semantics=("parallel", "arbitrary"),
            vmem_limit_bytes=vmem_limit),
        cost_estimate=cost,
    )(x, wqkv_t, bqkv, wp_t, bp)

    return out, attn.reshape(B * num_heads, N, N)


def attention_ref_np(x, w_qkv, b_qkv, w_proj, b_proj, num_heads):
    """Float64 numpy reference matching the PyTorch forward (precision-robust)."""
    x64 = np.asarray(x, np.float64)
    wq = np.asarray(w_qkv, np.float64)
    bq = np.asarray(b_qkv, np.float64)
    wp = np.asarray(w_proj, np.float64)
    bp = np.asarray(b_proj, np.float64)
    B, N, C = x64.shape
    hd = C // num_heads
    scale = float(hd) ** -0.5
    qkv = x64 @ wq.T + bq                                        # (B, N, 3C)
    qkv = qkv.reshape(B, N, 3, num_heads, hd).transpose(2, 0, 3, 1, 4)
    qkv = qkv.reshape(3, B * num_heads, N, hd)
    q, k, v = qkv[0], qkv[1], qkv[2]
    s = (q * scale) @ np.swapaxes(k, -1, -2)
    s = s - s.max(axis=-1, keepdims=True)
    e = np.exp(s)
    attn = e / e.sum(axis=-1, keepdims=True)
    out = (attn @ v).reshape(B, num_heads, N, hd).transpose(0, 2, 1, 3).reshape(B, N, C)
    out = out @ wp.T + bp
    return out, attn


def _to_np64(a):
    return np.asarray(jnp.asarray(a, jnp.float32), dtype=np.float64)


if __name__ == "__main__":
    B, N, C, H = 2, 16, 64, 4   # small shapes; hd = 16

    key = jax.random.PRNGKey(0)
    kx, kw1, kb1, kw2, kb2 = jax.random.split(key, 5)
    x = jax.random.normal(kx, (B, N, C), dtype=jnp.float32)
    w_qkv = jax.random.normal(kw1, (3 * C, C), dtype=jnp.float32) * (1.0 / np.sqrt(C))
    b_qkv = jax.random.normal(kb1, (3 * C,), dtype=jnp.float32) * 0.02
    w_proj = jax.random.normal(kw2, (C, C), dtype=jnp.float32) * (1.0 / np.sqrt(C))
    b_proj = jax.random.normal(kb2, (C,), dtype=jnp.float32) * 0.02

    out_ref, attn_ref_ = attention_ref_np(x, w_qkv, b_qkv, w_proj, b_proj, H)

    # 1) fp32 MXU-operand path: tracks the float64 reference tightly.
    out32, attn32 = attention_pallas(x, w_qkv, b_qkv, w_proj, b_proj, H,
                                     compute_dtype=jnp.float32,
                                     attn_dtype=jnp.float32)
    jax.block_until_ready((out32, attn32))
    assert out32.shape == (B, N, C) and attn32.shape == (B * H, N, N)
    np.testing.assert_allclose(_to_np64(out32), out_ref, atol=2e-3, rtol=2e-3)
    np.testing.assert_allclose(_to_np64(attn32), attn_ref_, atol=2e-3, rtol=2e-3)

    # 2) default path: bf16 MXU operands + bf16 attention-map writeback
    #    (fp32 accumulation); tolerances sized for bf16 operand rounding.
    out16, attn16 = attention_pallas(x, w_qkv, b_qkv, w_proj, b_proj, H)
    jax.block_until_ready((out16, attn16))
    assert out16.shape == (B, N, C) and attn16.shape == (B * H, N, N)
    np.testing.assert_allclose(_to_np64(out16), out_ref, atol=1e-1, rtol=1e-1)
    np.testing.assert_allclose(_to_np64(attn16), attn_ref_, atol=5e-2, rtol=5e-2)

    print("KERNEL_OK")
</pallas_src>

<mosaic_0001>
module attributes {stable_mosaic.version = 11 : i64} {
  func.func @_attention_kernel(%arg0: i32, %arg1: i32, %arg2: memref<1x16x64xf32, #tpu.memory_space<vmem>>, %arg3: memref<64x192xf32, #tpu.memory_space<vmem>>, %arg4: memref<1x192xf32, #tpu.memory_space<vmem>>, %arg5: memref<64x64xf32, #tpu.memory_space<vmem>>, %arg6: memref<1x64xf32, #tpu.memory_space<vmem>>, %arg7: memref<1x16x64xf32, #tpu.memory_space<vmem>>, %arg8: memref<1x1x16x16xf32, #tpu.memory_space<vmem>>, %arg9: memref<12x16x16xf32, #tpu.memory_space<vmem>>, %arg10: memref<4x16x16xf32, #tpu.memory_space<vmem>>) attributes {dimension_semantics = [#tpu.dimension_semantics<parallel>, #tpu.dimension_semantics<arbitrary>], iteration_bounds = array<i64: 2, 4>, scalar_prefetch = 0 : i64, scratch_operands = 2 : i64, tpu.core_type = #tpu.core_type<tc>, window_params = [{transform_indices = @transform_0, window_bounds = array<i64: 1, 16, 64>}, {pipeline_mode = #tpu.pipeline_mode<synchronous>, transform_indices = @transform_1, window_bounds = array<i64: 64, 192>}, {pipeline_mode = #tpu.pipeline_mode<synchronous>, transform_indices = @transform_2, window_bounds = array<i64: 1, 192>}, {pipeline_mode = #tpu.pipeline_mode<synchronous>, transform_indices = @transform_3, window_bounds = array<i64: 64, 64>}, {pipeline_mode = #tpu.pipeline_mode<synchronous>, transform_indices = @transform_4, window_bounds = array<i64: 1, 64>}, {transform_indices = @transform_5, window_bounds = array<i64: 1, 16, 64>}, {transform_indices = @transform_6, window_bounds = array<i64: 1, 1, 16, 16>}]} {
    %c0_i32 = arith.constant 0 : i32
    %0 = arith.cmpi eq, %arg1, %c0_i32 : i32
    %1 = arith.extui %0 : i1 to i32
    %c0_i32_0 = arith.constant 0 : i32
    %2 = arith.cmpi ne, %1, %c0_i32_0 : i32
    scf.if %2 {
      %c0_16 = arith.constant 0 : index
      %c0_17 = arith.constant 0 : index
      %c0_18 = arith.constant 0 : index
      %36 = vector.load %arg2[%c0_16, %c0_17, %c0_18] : memref<1x16x64xf32, #tpu.memory_space<vmem>>, vector<1x16x64xf32>
      %37 = vector.shape_cast %36 : vector<1x16x64xf32> to vector<16x64xf32>
      %c0_19 = arith.constant 0 : index
      %c0_20 = arith.constant 0 : index
      %38 = vector.load %arg3[%c0_19, %c0_20] : memref<64x192xf32, #tpu.memory_space<vmem>>, vector<64x192xf32>
      %cst_21 = arith.constant dense<0.000000e+00> : vector<16x192xf32>
      %39 = tpu.matmul %37, %38, %cst_21 {dimension_numbers = #tpu.dot_dimension_numbers<[1], [0], [0], [1], [0, 0, 1, 1], [], []>} : vector<16x64xf32>, vector<64x192xf32>, vector<16x192xf32> -> vector<16x192xf32>
      %c0_22 = arith.constant 0 : index
      %c0_23 = arith.constant 0 : index
      %40 = vector.load %arg4[%c0_22, %c0_23] : memref<1x192xf32, #tpu.memory_space<vmem>>, vector<1x192xf32>
      %41 = vector.broadcast %40 : vector<1x192xf32> to vector<16x192xf32>
      %42 = arith.addf %39, %41 : vector<16x192xf32>
      %43 = vector.extract_strided_slice %42 {offsets = [0, 0], sizes = [16, 16], strides = [1, 1]} : vector<16x192xf32> to vector<16x16xf32>
      %c0_24 = arith.constant 0 : index
      %c0_25 = arith.constant 0 : index
      %c0_26 = arith.constant 0 : index
      %44 = vector.load %arg9[%c0_24, %c0_25, %c0_26] : memref<12x16x16xf32, #tpu.memory_space<vmem>>, vector<1x16x16xf32>
      %45 = vector.shape_cast %44 : vector<1x16x16xf32> to vector<16x16xf32>
      %46 = vector.shape_cast %43 : vector<16x16xf32> to vector<1x16x16xf32>
      tpu.vector_store %arg9[%c0_24, %c0_25, %c0_26], %46 {strides = array<i32>} : memref<12x16x16xf32, #tpu.memory_space<vmem>>, vector<1x16x16xf32>,
      %47 = vector.extract_strided_slice %42 {offsets = [0, 16], sizes = [16, 16], strides = [1, 1]} : vector<16x192xf32> to vector<16x16xf32>
      %c1 = arith.constant 1 : index
      %c0_27 = arith.constant 0 : index
      %c0_28 = arith.constant 0 : index
      %48 = vector.load %arg9[%c1, %c0_27, %c0_28] : memref<12x16x16xf32, #tpu.memory_space<vmem>>, vector<1x16x16xf32>
      %49 = vector.shape_cast %48 : vector<1x16x16xf32> to vector<16x16xf32>
      %50 = vector.shape_cast %47 : vector<16x16xf32> to vector<1x16x16xf32>
      tpu.vector_store %arg9[%c1, %c0_27, %c0_28], %50 {strides = array<i32>} : memref<12x16x16xf32, #tpu.memory_space<vmem>>, vector<1x16x16xf32>,
      %51 = vector.extract_strided_slice %42 {offsets = [0, 32], sizes = [16, 16], strides = [1, 1]} : vector<16x192xf32> to vector<16x16xf32>
      %c2 = arith.constant 2 : index
      %c0_29 = arith.constant 0 : index
      %c0_30 = arith.constant 0 : index
      %52 = vector.load %arg9[%c2, %c0_29, %c0_30] : memref<12x16x16xf32, #tpu.memory_space<vmem>>, vector<1x16x16xf32>
      %53 = vector.shape_cast %52 : vector<1x16x16xf32> to vector<16x16xf32>
      %54 = vector.shape_cast %51 : vector<16x16xf32> to vector<1x16x16xf32>
      tpu.vector_store %arg9[%c2, %c0_29, %c0_30], %54 {strides = array<i32>} : memref<12x16x16xf32, #tpu.memory_space<vmem>>, vector<1x16x16xf32>,
      %55 = vector.extract_strided_slice %42 {offsets = [0, 48], sizes = [16, 16], strides = [1, 1]} : vector<16x192xf32> to vector<16x16xf32>
      %c3 = arith.constant 3 : index
      %c0_31 = arith.constant 0 : index
      %c0_32 = arith.constant 0 : index
      %56 = vector.load %arg9[%c3, %c0_31, %c0_32] : memref<12x16x16xf32, #tpu.memory_space<vmem>>, vector<1x16x16xf32>
      %57 = vector.shape_cast %56 : vector<1x16x16xf32> to vector<16x16xf32>
      %58 = vector.shape_cast %55 : vector<16x16xf32> to vector<1x16x16xf32>
      tpu.vector_store %arg9[%c3, %c0_31, %c0_32], %58 {strides = array<i32>} : memref<12x16x16xf32, #tpu.memory_space<vmem>>, vector<1x16x16xf32>,
      %59 = vector.extract_strided_slice %42 {offsets = [0, 64], sizes = [16, 16], strides = [1, 1]} : vector<16x192xf32> to vector<16x16xf32>
      %c4 = arith.constant 4 : index
      %c0_33 = arith.constant 0 : index
      %c0_34 = arith.constant 0 : index
      %60 = vector.load %arg9[%c4, %c0_33, %c0_34] : memref<12x16x16xf32, #tpu.memory_space<vmem>>, vector<1x16x16xf32>
      %61 = vector.shape_cast %60 : vector<1x16x16xf32> to vector<16x16xf32>
      %62 = vector.shape_cast %59 : vector<16x16xf32> to vector<1x16x16xf32>
      tpu.vector_store %arg9[%c4, %c0_33, %c0_34], %62 {strides = array<i32>} : memref<12x16x16xf32, #tpu.memory_space<vmem>>, vector<1x16x16xf32>,
      %63 = vector.extract_strided_slice %42 {offsets = [0, 80], sizes = [16, 16], strides = [1, 1]} : vector<16x192xf32> to vector<16x16xf32>
      %c5 = arith.constant 5 : index
      %c0_35 = arith.constant 0 : index
      %c0_36 = arith.constant 0 : index
      %64 = vector.load %arg9[%c5, %c0_35, %c0_36] : memref<12x16x16xf32, #tpu.memory_space<vmem>>, vector<1x16x16xf32>
      %65 = vector.shape_cast %64 : vector<1x16x16xf32> to vector<16x16xf32>
      %66 = vector.shape_cast %63 : vector<16x16xf32> to vector<1x16x16xf32>
      tpu.vector_store %arg9[%c5, %c0_35, %c0_36], %66 {strides = array<i32>} : memref<12x16x16xf32, #tpu.memory_space<vmem>>, vector<1x16x16xf32>,
      %67 = vector.extract_strided_slice %42 {offsets = [0, 96], sizes = [16, 16], strides = [1, 1]} : vector<16x192xf32> to vector<16x16xf32>
      %c6 = arith.constant 6 : index
      %c0_37 = arith.constant 0 : index
      %c0_38 = arith.constant 0 : index
      %68 = vector.load %arg9[%c6, %c0_37, %c0_38] : memref<12x16x16xf32, #tpu.memory_space<vmem>>, vector<1x16x16xf32>
      %69 = vector.shape_cast %68 : vector<1x16x16xf32> to vector<16x16xf32>
      %70 = vector.shape_cast %67 : vector<16x16xf32> to vector<1x16x16xf32>
      tpu.vector_store %arg9[%c6, %c0_37, %c0_38], %70 {strides = array<i32>} : memref<12x16x16xf32, #tpu.memory_space<vmem>>, vector<1x16x16xf32>,
      %71 = vector.extract_strided_slice %42 {offsets = [0, 112], sizes = [16, 16], strides = [1, 1]} : vector<16x192xf32> to vector<16x16xf32>
      %c7 = arith.constant 7 : index
      %c0_39 = arith.constant 0 : index
      %c0_40 = arith.constant 0 : index
      %72 = vector.load %arg9[%c7, %c0_39, %c0_40] : memref<12x16x16xf32, #tpu.memory_space<vmem>>, vector<1x16x16xf32>
      %73 = vector.shape_cast %72 : vector<1x16x16xf32> to vector<16x16xf32>
      %74 = vector.shape_cast %71 : vector<16x16xf32> to vector<1x16x16xf32>
      tpu.vector_store %arg9[%c7, %c0_39, %c0_40], %74 {strides = array<i32>} : memref<12x16x16xf32, #tpu.memory_space<vmem>>, vector<1x16x16xf32>,
      %75 = vector.extract_strided_slice %42 {offsets = [0, 128], sizes = [16, 16], strides = [1, 1]} : vector<16x192xf32> to vector<16x16xf32>
      %c8 = arith.constant 8 : index
      %c0_41 = arith.constant 0 : index
      %c0_42 = arith.constant 0 : index
      %76 = vector.load %arg9[%c8, %c0_41, %c0_42] : memref<12x16x16xf32, #tpu.memory_space<vmem>>, vector<1x16x16xf32>
      %77 = vector.shape_cast %76 : vector<1x16x16xf32> to vector<16x16xf32>
      %78 = vector.shape_cast %75 : vector<16x16xf32> to vector<1x16x16xf32>
      tpu.vector_store %arg9[%c8, %c0_41, %c0_42], %78 {strides = array<i32>} : memref<12x16x16xf32, #tpu.memory_space<vmem>>, vector<1x16x16xf32>,
      %79 = vector.extract_strided_slice %42 {offsets = [0, 144], sizes = [16, 16], strides = [1, 1]} : vector<16x192xf32> to vector<16x16xf32>
      %c9 = arith.constant 9 : index
      %c0_43 = arith.constant 0 : index
      %c0_44 = arith.constant 0 : index
      %80 = vector.load %arg9[%c9, %c0_43, %c0_44] : memref<12x16x16xf32, #tpu.memory_space<vmem>>, vector<1x16x16xf32>
      %81 = vector.shape_cast %80 : vector<1x16x16xf32> to vector<16x16xf32>
      %82 = vector.shape_cast %79 : vector<16x16xf32> to vector<1x16x16xf32>
      tpu.vector_store %arg9[%c9, %c0_43, %c0_44], %82 {strides = array<i32>} : memref<12x16x16xf32, #tpu.memory_space<vmem>>, vector<1x16x16xf32>,
      %83 = vector.extract_strided_slice %42 {offsets = [0, 160], sizes = [16, 16], strides = [1, 1]} : vector<16x192xf32> to vector<16x16xf32>
      %c10 = arith.constant 10 : index
      %c0_45 = arith.constant 0 : index
      %c0_46 = arith.constant 0 : index
      %84 = vector.load %arg9[%c10, %c0_45, %c0_46] : memref<12x16x16xf32, #tpu.memory_space<vmem>>, vector<1x16x16xf32>
      %85 = vector.shape_cast %84 : vector<1x16x16xf32> to vector<16x16xf32>
      %86 = vector.shape_cast %83 : vector<16x16xf32> to vector<1x16x16xf32>
      tpu.vector_store %arg9[%c10, %c0_45, %c0_46], %86 {strides = array<i32>} : memref<12x16x16xf32, #tpu.memory_space<vmem>>, vector<1x16x16xf32>,
      %87 = vector.extract_strided_slice %42 {offsets = [0, 176], sizes = [16, 16], strides = [1, 1]} : vector<16x192xf32> to vector<16x16xf32>
      %c11 = arith.constant 11 : index
      %c0_47 = arith.constant 0 : index
      %c0_48 = arith.constant 0 : index
      %88 = vector.load %arg9[%c11, %c0_47, %c0_48] : memref<12x16x16xf32, #tpu.memory_space<vmem>>, vector<1x16x16xf32>
      %89 = vector.shape_cast %88 : vector<1x16x16xf32> to vector<16x16xf32>
      %90 = vector.shape_cast %87 : vector<16x16xf32> to vector<1x16x16xf32>
      tpu.vector_store %arg9[%c11, %c0_47, %c0_48], %90 {strides = array<i32>} : memref<12x16x16xf32, #tpu.memory_space<vmem>>, vector<1x16x16xf32>,
    } else {
    }
    %3 = arith.index_cast %arg1 : i32 to index
    %c0 = arith.constant 0 : index
    %c0_1 = arith.constant 0 : index
    %4 = vector.load %arg9[%3, %c0, %c0_1] : memref<12x16x16xf32, #tpu.memory_space<vmem>>, vector<1x16x16xf32>
    %5 = vector.shape_cast %4 : vector<1x16x16xf32> to vector<16x16xf32>
    %c4_i32 = arith.constant 4 : i32
    %6 = arith.addi %c4_i32, %arg1 : i32
    %7 = arith.index_cast %6 : i32 to index
    %c0_2 = arith.constant 0 : index
    %c0_3 = arith.constant 0 : index
    %8 = vector.load %arg9[%7, %c0_2, %c0_3] : memref<12x16x16xf32, #tpu.memory_space<vmem>>, vector<1x16x16xf32>
    %9 = vector.shape_cast %8 : vector<1x16x16xf32> to vector<16x16xf32>
    %c8_i32 = arith.constant 8 : i32
    %10 = arith.addi %c8_i32, %arg1 : i32
    %11 = arith.index_cast %10 : i32 to index
    %c0_4 = arith.constant 0 : index
    %c0_5 = arith.constant 0 : index
    %12 = vector.load %arg9[%11, %c0_4, %c0_5] : memref<12x16x16xf32, #tpu.memory_space<vmem>>, vector<1x16x16xf32>
    %13 = vector.shape_cast %12 : vector<1x16x16xf32> to vector<16x16xf32>
    %cst = arith.constant dense<0.000000e+00> : vector<16x16xf32>
    %14 = tpu.matmul %5, %9, %cst {dimension_numbers = #tpu.dot_dimension_numbers<[1], [1], [0], [0], [0, 0, 1, 0], [], []>} : vector<16x16xf32>, vector<16x16xf32>, vector<16x16xf32> -> vector<16x16xf32>
    %cst_6 = arith.constant dense<0xFF800000> : vector<16xf32>
    %15 = vector.multi_reduction <maximumf>, %14, %cst_6 [1] : vector<16x16xf32> to vector<16xf32>
    %16 = vector.shape_cast %15 : vector<16xf32> to vector<16x1xf32>
    %17 = vector.broadcast %16 : vector<16x1xf32> to vector<16x16xf32>
    %18 = arith.subf %14, %17 : vector<16x16xf32>
    %19 = math.exp %18 : vector<16x16xf32>
    %cst_7 = arith.constant dense<0.000000e+00> : vector<16xf32>
    %20 = vector.multi_reduction <add>, %19, %cst_7 [1] : vector<16x16xf32> to vector<16xf32>
    %21 = vector.shape_cast %20 : vector<16xf32> to vector<16x1xf32>
    %22 = tpu.reciprocal %21 : vector<16x1xf32> -> vector<16x1xf32>
    %23 = vector.broadcast %22 : vector<16x1xf32> to vector<16x16xf32>
    %24 = arith.mulf %19, %23 : vector<16x16xf32>
    %c0_8 = arith.constant 0 : index
    %c0_9 = arith.constant 0 : index
    %c0_10 = arith.constant 0 : index
    %c0_11 = arith.constant 0 : index
    %25 = vector.load %arg8[%c0_8, %c0_9, %c0_10, %c0_11] : memref<1x1x16x16xf32, #tpu.memory_space<vmem>>, vector<1x1x16x16xf32>
    %26 = vector.shape_cast %25 : vector<1x1x16x16xf32> to vector<16x16xf32>
    %27 = vector.shape_cast %24 : vector<16x16xf32> to vector<1x1x16x16xf32>
    tpu.vector_store %arg8[%c0_8, %c0_9, %c0_10, %c0_11], %27 {strides = array<i32>} : memref<1x1x16x16xf32, #tpu.memory_space<vmem>>, vector<1x1x16x16xf32>,
    %cst_12 = arith.constant dense<0.000000e+00> : vector<16x16xf32>
    %28 = tpu.matmul %24, %13, %cst_12 {dimension_numbers = #tpu.dot_dimension_numbers<[1], [0], [0], [1], [0, 0, 1, 1], [], []>} : vector<16x16xf32>, vector<16x16xf32>, vector<16x16xf32> -> vector<16x16xf32>
    %29 = arith.index_cast %arg1 : i32 to index
    %c0_13 = arith.constant 0 : index
    %c0_14 = arith.constant 0 : index
    %30 = vector.load %arg10[%29, %c0_13, %c0_14] : memref<4x16x16xf32, #tpu.memory_space<vmem>>, vector<1x16x16xf32>
    %31 = vector.shape_cast %30 : vector<1x16x16xf32> to vector<16x16xf32>
    %32 = vector.shape_cast %28 : vector<16x16xf32> to vector<1x16x16xf32>
    tpu.vector_store %arg10[%29, %c0_13, %c0_14], %32 {strides = array<i32>} : memref<4x16x16xf32, #tpu.memory_space<vmem>>, vector<1x16x16xf32>,
    %c3_i32 = arith.constant 3 : i32
    %33 = arith.cmpi eq, %arg1, %c3_i32 : i32
    %34 = arith.extui %33 : i1 to i32
    %c0_i32_15 = arith.constant 0 : i32
    %35 = arith.cmpi ne, %34, %c0_i32_15 : i32
    scf.if %35 {
      %c0_16 = arith.constant 0 : index
      %c0_17 = arith.constant 0 : index
      %c0_18 = arith.constant 0 : index
      %36 = vector.load %arg10[%c0_16, %c0_17, %c0_18] : memref<4x16x16xf32, #tpu.memory_space<vmem>>, vector<1x16x16xf32>
      %37 = vector.shape_cast %36 : vector<1x16x16xf32> to vector<16x16xf32>
      %c1 = arith.constant 1 : index
      %c0_19 = arith.constant 0 : index
      %c0_20 = arith.constant 0 : index
      %38 = vector.load %arg10[%c1, %c0_19, %c0_20] : memref<4x16x16xf32, #tpu.memory_space<vmem>>, vector<1x16x16xf32>
      %39 = vector.shape_cast %38 : vector<1x16x16xf32> to vector<16x16xf32>
      %c2 = arith.constant 2 : index
      %c0_21 = arith.constant 0 : index
      %c0_22 = arith.constant 0 : index
      %40 = vector.load %arg10[%c2, %c0_21, %c0_22] : memref<4x16x16xf32, #tpu.memory_space<vmem>>, vector<1x16x16xf32>
      %41 = vector.shape_cast %40 : vector<1x16x16xf32> to vector<16x16xf32>
      %c3 = arith.constant 3 : index
      %c0_23 = arith.constant 0 : index
      %c0_24 = arith.constant 0 : index
      %42 = vector.load %arg10[%c3, %c0_23, %c0_24] : memref<4x16x16xf32, #tpu.memory_space<vmem>>, vector<1x16x16xf32>
      %43 = vector.shape_cast %42 : vector<1x16x16xf32> to vector<16x16xf32>
      %44 = tpu.concatenate %37, %39, %41, %43 in 1 : vector<16x16xf32>, vector<16x16xf32>, vector<16x16xf32>, vector<16x16xf32> -> vector<16x64xf32>
      %c0_25 = arith.constant 0 : index
      %c0_26 = arith.constant 0 : index
      %45 = vector.load %arg5[%c0_25, %c0_26] : memref<64x64xf32, #tpu.memory_space<vmem>>, vector<64x64xf32>
      %cst_27 = arith.constant dense<0.000000e+00> : vector<16x64xf32>
      %46 = tpu.matmul %44, %45, %cst_27 {dimension_numbers = #tpu.dot_dimension_numbers<[1], [0], [0], [1], [0, 0, 1, 1], [], []>} : vector<16x64xf32>, vector<64x64xf32>, vector<16x64xf32> -> vector<16x64xf32>
      %c0_28 = arith.constant 0 : index
      %c0_29 = arith.constant 0 : index
      %47 = vector.load %arg6[%c0_28, %c0_29] : memref<1x64xf32, #tpu.memory_space<vmem>>, vector<1x64xf32>
      %48 = vector.broadcast %47 : vector<1x64xf32> to vector<16x64xf32>
      %49 = arith.addf %46, %48 : vector<16x64xf32>
      %c0_30 = arith.constant 0 : index
      %c0_31 = arith.constant 0 : index
      %c0_32 = arith.constant 0 : index
      %50 = vector.load %arg7[%c0_30, %c0_31, %c0_32] : memref<1x16x64xf32, #tpu.memory_space<vmem>>, vector<1x16x64xf32>
      %51 = vector.shape_cast %50 : vector<1x16x64xf32> to vector<16x64xf32>
      %52 = vector.shape_cast %49 : vector<16x64xf32> to vector<1x16x64xf32>
      tpu.vector_store %arg7[%c0_30, %c0_31, %c0_32], %52 {strides = array<i32>} : memref<1x16x64xf32, #tpu.memory_space<vmem>>, vector<1x16x64xf32>,
    } else {
    }
    return
  }
  func.func @transform_0(%arg0: i32, %arg1: i32) -> (i32, i32, i32) {
    %c0_i32 = arith.constant 0 : i32
    %c0_i32_0 = arith.constant 0 : i32
    %c0_i32_1 = arith.constant 0 : i32
    return %arg0, %c0_i32, %c0_i32_0 : i32, i32, i32
  }
  func.func @transform_1(%arg0: i32, %arg1: i32) -> (i32, i32) {
    %c0_i32 = arith.constant 0 : i32
    %c0_i32_0 = arith.constant 0 : i32
    %c0_i32_1 = arith.constant 0 : i32
    return %c0_i32, %c0_i32_0 : i32, i32
  }
  func.func @transform_2(%arg0: i32, %arg1: i32) -> (i32, i32) {
    %c0_i32 = arith.constant 0 : i32
    %c0_i32_0 = arith.constant 0 : i32
    %c0_i32_1 = arith.constant 0 : i32
    return %c0_i32, %c0_i32_0 : i32, i32
  }
  func.func @transform_3(%arg0: i32, %arg1: i32) -> (i32, i32) {
    %c0_i32 = arith.constant 0 : i32
    %c0_i32_0 = arith.constant 0 : i32
    %c0_i32_1 = arith.constant 0 : i32
    return %c0_i32, %c0_i32_0 : i32, i32
  }
  func.func @transform_4(%arg0: i32, %arg1: i32) -> (i32, i32) {
    %c0_i32 = arith.constant 0 : i32
    %c0_i32_0 = arith.constant 0 : i32
    %c0_i32_1 = arith.constant 0 : i32
    return %c0_i32, %c0_i32_0 : i32, i32
  }
  func.func @transform_5(%arg0: i32, %arg1: i32) -> (i32, i32, i32) {
    %c0_i32 = arith.constant 0 : i32
    %c0_i32_0 = arith.constant 0 : i32
    %c0_i32_1 = arith.constant 0 : i32
    return %arg0, %c0_i32, %c0_i32_0 : i32, i32, i32
  }
  func.func @transform_6(%arg0: i32, %arg1: i32) -> (i32, i32, i32, i32) {
    %c0_i32 = arith.constant 0 : i32
    %c0_i32_0 = arith.constant 0 : i32
    %c0_i32_1 = arith.constant 0 : i32
    return %arg0, %arg1, %c0_i32, %c0_i32_0 : i32, i32, i32, i32
  }
}

</mosaic_0001>

<bundles_post_ra>
// kernel: tpu_custom_call.1
= control target key start
LH: loop header
LB: loop body
LE: loop exit
PB: predicated region body
PF: predicated region fallthrough
CT: control target
= control target key end

     0   :  { %s2026_s0 = inlined_call_operand.hbm [shape: f32[2,16,64], index: 0, kind: input, shape index: {}]   ;;  %s2027_s1 = inlined_call_operand.hbm [shape: f32[64,192], index: 1, kind: input, shape index: {}]   ;;  %s2028_s2 = inlined_call_operand.vmem [shape: f32[1,192], index: 2, kind: input, shape index: {}]   ;;  %s2029_s3 = inlined_call_operand.hbm [shape: f32[64,64], index: 3, kind: input, shape index: {}]   ;;  %s2030_s4 = inlined_call_operand.vmem [shape: f32[1,64], index: 4, kind: input, shape index: {}]   ;;  %s2031_s5 = inlined_call_operand.hbm [shape: f32[2,16,64], index: 5, kind: output, shape index: {0}]   ;;  %s2032_s6 = inlined_call_operand.hbm [shape: f32[2,4,16,16], index: 6, kind: output, shape index: {1}]  }
   0x1   :  { %2054 = sst [smem:[#allocation26_spill]] %s2026_s0 }
   0x2   :  { %2055 = sst [smem:[#allocation27_spill]] %s2027_s1 }
   0x3   :  { %2056 = sst [smem:[#allocation28_spill]] %s2028_s2 }
   0x4   :  { %2057 = sst [smem:[#allocation29_spill]] %s2029_s3 }
   0x5   :  { %2058 = sst [smem:[#allocation30_spill]] %s2030_s4 }
   0x6   :  { %2059 = sst [smem:[#allocation31_spill]] %s2031_s5 }
   0x7   :  { %2060 = sst [smem:[#allocation32_spill]] %s2032_s6 }
   0x8   :  { %12 = vsyncpa [#allocation5], 0 }
   0x9   :  { %14 = vsyncpa [#allocation5 + $0x1], 0 }
   0xa   :  { %15 = vsyncpa [#allocation8], 0 }
   0xb   :  { %16 = vsyncpa [#allocation6], 0 }
   0xc   :  { %18 = vsyncpa [#allocation6 + $0x1], 0 }
   0xd   :  { %19 = vsyncpa [#allocation12], 0 }
   0xe   :  { %21 = vsyncpa [#allocation12 + $0x1], 0  ;;  %s1642_s21 = smov 0   ;;  %s1644_s22 = smov 0  }
   0xf   :  { %s1646_s23 = smov 0   ;;  %s1648_s24 = smov 0  }
  0x10   :  { %s1650_s25 = smov 0   ;;  %s1652_s26 = smov 0  }
  0x11   :  { %s1654_s27 = smov 0   ;;  %s1656_s28 = smov 0  }
  0x12   :  { %s1658_s29 = smov 0   ;;  %s1660_s30 = smov 0  }
  0x13   :  { %s1662_s7 = smov 0  }
  0x14 LB: > { %2061 = sst [smem:[#allocation17_spill]] %s1543_s21  ;;  %s1083_s8 = sadd.s32 4294967295, %s1583_s7   ;;  %s1583_s7 = sphi %s1662_s7, %s27_s7   ;;  %s1579_s30 = sphi %s1660_s30, %s2114_s30   ;;  %s1575_s29 = sphi %s1658_s29, %s2113_s29   ;;  %s1571_s28 = sphi %s1656_s28, %s2112_s28   ;;  %s1567_s27 = sphi %s1654_s27, %s2104_s27   ;;  %s1563_s26 = sphi %s1652_s26, %s2111_s26   ;;  %s1559_s25 = sphi %s1650_s25, %s2110_s25   ;;  %s1555_s24 = sphi %s1648_s24, %s2109_s24   ;;  %s1551_s23 = sphi %s1646_s23, %s2108_s23   ;;  %s1547_s22 = sphi %s1644_s22, %s2107_s22   ;;  %s1543_s21 = sphi %s1642_s21, %s2106_s21  }
  0x15   : > { %2062 = sst [smem:[#allocation18_spill]] %s1555_s24  ;;  %s1084_s9 = sadd.s32 4294967294, %s1583_s7  }
  0x16   : > { %2063 = sst [smem:[#allocation19_spill]] %s1571_s28  ;;  %p59_p0 = scmp.ne.s32.totalorder %s1559_s25, %s1555_s24 }
  0x17   : > { %2064 = sst [smem:[#allocation20_spill]] %s1575_s29  ;;  %p1701_p1 = scmp.eq.s32.totalorder %s1083_s8, 0 }
  0x18   : > { %p1705_p2 = scmp.eq.s32.totalorder %s1083_s8, 7  ;;  %p173_p3 = scmp.eq.s32.totalorder %s1084_s9, 7 }
  0x19   : > { %s2065_s10 = scalar_select %p1701_p1, 1, 0 }
  0x1a   : > { %p1711_p4 = por %p1701_p1, %p59_p0  ;;  %p1716_p5 = por %p173_p3, %p59_p0 }
  0x1b   : > { %p194_p6 = scmp.ne.s32.totalorder %s1551_s23, %s1547_s22  ;;  %p200_p7 = scmp.ne.s32.totalorder %s1547_s22, %s1543_s21 }
  0x1c   : > { %s2067_s12 = scalar_select %p1711_p4, 1, 0 }
  0x1d   : > { %s2068_s14 = scalar_select %p1716_p5, 1, 0 }
  0x1e   : > { %p1085_p8 = scmp.ge.s32.totalorder %s1583_s7, 1  ;;  %p1727_p9 = por %p194_p6, %p1705_p2 }
  0x1f   : > { %2069 = sst [smem:[#allocation21_spill]] %s2068_s14  ;;  %p208_p10 = scmp.lt.s32.totalorder %s1583_s7, 9 }
  0x20   : > { %s2070_s15 = scalar_select %p1727_p9, 1, 0 }
  0x21   : > { %p1732_p11 = por %p200_p7, %p173_p3  ;;  %p1736_p12 = pnand %p1085_p8, %p208_p10 }
  0x22   : > { %2071 = sst [smem:[#allocation22_spill]] %s2070_s15  ;;  %s1585_s18 = smov [#allocation7]  }
  0x23   : > { %s2072_s16 = scalar_select %p1732_p11, 1, 0 }
  0x24   : > { %s220_s19 = sshll.u32 %s1585_s18, 4  ;;  %p1210_p13 = pneg %p1736_p12  ;;  %s221_s19 = int_to_ptr.vmem [resolvable:$true] %s220_s19 }
  0x25   : > { %2073 = sst [smem:[#allocation23_spill]] %s2072_s16  ;;  %s1586_s8 = smov [#allocation9]  }
  0x26   : > { %p1744_p0 = pnand %p1210_p13, %p1701_p1  ;;  %s236_s9 = sshll.u32 %s1586_s8, 4  ;;  %s237_s9 = int_to_ptr.vmem [resolvable:$true] %s236_s9 }
  0x27   : > { %s1360_s13 = scalar_lea.vmem %s221_s19, 2048  ;;  %p1368_p10 = scmp.lt.s32.totalorder %s221_s19, %s221_s19 }
  0x28   : > { %p1351_p3 = pneg %p1744_p0  ;;  %p1361_p6 = scmp.ne.s32.totalorder %s221_s19, %s1360_s13 }
  0x29   : > { %p1369_p11 = scmp.lt.s32.totalorder %s1360_s13, %s1360_s13 }
  0x2a   : > { %p1363_p7 = pnand %p1361_p6, %p1351_p3 }
  0x2b   : > { %p1370_p5 = por %p1369_p11, %p1368_p10 }
  0x2c   : > { %p1364_p8 = pneg %p1363_p7 }
  0x2e   : > { %p1371_p13 = pnand %p1370_p5, %p1364_p8 }
  0x30   : > { %1374 = shalt.err (!%p1371_p13)
}
  0x31   : > { %s1587_s18 = smov 256   ;;  %s1588_s16 = smov 16  }
  0x32   : > { %s2076_s1 = sld [smem:[#allocation27_spill]]  ;;  %s1386_s14 = scalar_lea.vmem %s237_s9, 1024 }
  0x33   : > { %p1387_p9 = scmp.ne.s32.totalorder %s237_s9, %s1386_s14  ;;  %p1394_p1 = scmp.lt.s32.totalorder %s237_s9, %s237_s9 }
  0x34   : > { %p1395_p4 = scmp.lt.s32.totalorder %s1386_s14, %s1386_s14 }
  0x35   : > { %p1389_p6 = pnand %p1387_p9, %p1351_p3 }
  0x36   : > { %p1396_p11 = por %p1395_p4, %p1394_p1 }
  0x37   : > { %p1390_p7 = pneg %p1389_p6 }
  0x38   : > { %1213 = dma.hbm_to_vmem [thread:$0]  (!%p1744_p0), %s2076_s1, 2048, %s221_s19, [#allocation8], %s1587_s18, %s1587_s18, %s1588_s16  }
  0x39   : > { %p1397_p5 = pnand %p1396_p11, %p1390_p7 }
  0x3b   : > { %1400 = shalt.err (!%p1397_p5)
}
  0x3c   : > { %s2040_s13 = smov 128   ;;  %s2041_s21 = smov 8  }
  0x3d   : > { %s2077_s3 = sld [smem:[#allocation29_spill]]  ;;  %s36_s19 = sadd.s32 1, %s1575_s29 }
  0x3e   : > { %p37_p1 = scmp.ge.s32.totalorder %s36_s19, 4  ;;  %s39_s18 = sadd.s32 1, %s1579_s30 }
  0x3f   : > { %s46_s8 = sadd.s32 1, %s1563_s26  ;;  %p53_p4 = scmp.ne.s32.totalorder %s1563_s26, %s1559_s25 }
  0x40   : > { %s2116_s19 = smov (%p37_p1, %s36_s19), 0  ;;  %s2118_s18 = smov (!%p37_p1, %s39_s18), %s1579_s30 }
  0x41   : > { %2078 = sst [smem:[#allocation24_spill]] %s2116_s19  ;;  %p54_p9 = scmp.eq.s32.totalorder %s1583_s7, 0 }
  0x42   : > { %p1780_p3 = por %p1705_p2, %p53_p4  ;;  %p1230_p10 = scmp.lt.s32.totalorder %s1583_s7, 8 }
  0x43   : > { %1216 = dma.hbm_to_vmem [thread:$0]  (!%p1744_p0), %s2077_s3, 1024, %s237_s9, [#allocation8], %s2040_s13, %s2040_s13, %s2041_s21  }
  0x44   : > { %s2079_s20 = scalar_select %p1780_p3, 1, 0 }
  0x45   : > { %p41_p0 = scmp.ge.s32.totalorder %s2118_s18, 2  ;;  %s180_s9 = ssub.s32 %s1575_s29, %s2116_s19 }
  0x46   : > { %2080 = sst [smem:[#allocation25_spill]] %s2079_s20  ;;  %p1786_p8 = por %p54_p9, %p53_p4 }
  0x47   : > { %s2120_s18 = smov (%p41_p0, %s2118_s18), 0  ;;  %s253_s16 = sand.u32 1, %s1563_s26  }
  0x48   : > { %s1127_s13 = sshll.u32 %s1579_s30, 8  ;;  %s43_s21 = ssub.s32 %s1579_s30, %s2120_s18 }
  0x49   : > { %p44_p13 = scmp.eq.s32.totalorder %s43_s21, 0  ;;  %s181_s11 = sor.u32 %s180_s9, %s43_s21 }
  0x4a   : > { %p182_p2 = scmp.eq.s32.totalorder %s181_s11, 0  ;;  %s1089_s1 = sshll.u32 %s253_s16, 4 }
  0x4b   : > { %s1798_s3 = scalar_select %p44_p13, %s1563_s26, %s46_s8  }
  0x4c   : > { %s2082_s19 = sadd.s32 1, %s1551_s23  ;;  %s2083_s0 = sld [smem:[#allocation26_spill]] }
  0x4d   : > { %s1803_s29 = scalar_select %p182_p2, %s1551_s23, %s2082_s19  }
  0x4e   : > { %s257_s5 = scalar_lea.vmem [#allocation4], %s1089_s1  ;;  %p1812_p6 = pnand %p1230_p10, %p1786_p8 }
  0x4f   : > { %s264_s20 = sshll.u32 %s257_s5, 4  ;;  %s254_s21 = scalar_lea.sflag [#allocation5], %s253_s16  ;;  %s265_s20 = int_to_ptr.vmem [resolvable:$true] %s264_s20 }
  0x50   : > { %p1403_p7 = pneg %p1812_p6  ;;  %s1414_s8 = scalar_lea.vmem %s265_s20, 256 }
  0x51   : > { %p1415_p11 = scmp.ne.s32.totalorder %s265_s20, %s1414_s8  ;;  %s1591_s19 = smov [#allocation4]  }
  0x52   : > { %s263_s15 = scalar_lea.hbm %s2083_s0, %s1127_s13  ;;  %s1419_s6 = sshll.u32 %s1591_s19, 4  ;;  %s1420_s6 = int_to_ptr.vmem [resolvable:$false] %s1419_s6 }
  0x53   : > { %p1417_p5 = pnand %p1415_p11, %p1403_p7  ;;  %s1421_s1 = scalar_lea.vmem %s1420_s6, 512 }
  0x54   : > { %p1422_p4 = scmp.lt.s32.totalorder %s265_s20, %s1420_s6  ;;  %p1423_p9 = scmp.lt.s32.totalorder %s1421_s1, %s1414_s8 }
  0x55   : > { %p1418_p1 = pneg %p1417_p5 }
  0x56   : > { %p1424_p0 = por %p1423_p9, %p1422_p4 }
  0x58   : > { %p1425_p8 = pnand %p1424_p0, %p1418_p1 }
  0x5a   : > { %1428 = shalt.err (!%p1425_p8)
}
  0x5b   : > { %s2085_s5 = smov 8   ;;  %s2086_s24 = smov 128  }
  0x5c   : > { %1220 = dma.hbm_to_vmem [thread:$0]  (!%p1812_p6), %s263_s15, 256, %s265_s20, %s254_s21, %s2086_s24, %s2086_s24, %s2085_s5  }
  0x5d   : > { %276 = sbr.rel (%p1736_p12) target bundleno = 1579 (0x62b), region = 40  ;;  %s1826_s13 = sand.u32 (!%p1736_p12), 1, %s1559_s25  }
  0x5e   : > { %s1093_s9 = sshll.u32 (!%p1736_p12), %s1826_s13, 4  ;;  %s279_s14 = scalar_lea.sflag (!%p1736_p12), [#allocation5], %s1826_s13 }
  0x5f   : > { %s1830_s16 = scalar_lea.vmem (!%p1736_p12), [#allocation4], %s1093_s9  ;;  %p2087_p10 = scmp.ne.s32.totalorder (!%p1736_p12), %s2067_s12, 0 }
  0x62   : > { %1526 = dma.done.wait (%p2087_p10), %s279_s14, 256  }
  0x63   : > { %1528 = vsyncadd (%p2087_p10), %s279_s14, 4294967040  ;;  %p2088_p13 = scmp.ne.s32.totalorder %s2065_s10, 0 }
  0x65   : > { %1530 = dma.done.wait (%p2088_p13), [#allocation8], 3072  }
  0x66   : > { %1532 = vsyncadd (%p2088_p13), [#allocation8], 4294964224  ;;  %s2052_s28 = sand.u32 1, %s1547_s22   ;;  %s1843_s17 = scalar_lea.vmem [#allocation10], %s1093_s9 }
  0x67   : > { %s1097_s15 = sshll.u32 %s2052_s28, 4  ;;  %p1098_p12 = scmp.ne.s32.totalorder %s1567_s27, 0 }
  0x68   : > { %s1845_s20 = scalar_lea.vmem [#allocation11], %s1097_s15  ;;  %s2089_s2 = sld [smem:[#allocation28_spill]] (!%p1098_p12) }
  0x69   : > { %327 = sbr.rel (%p1098_p12) target bundleno = 474 (0x1da), region = 56  ;;  %s1593_s11 = smov (!%p1098_p12), 96  }
  0x6a   : > { %s1594_s21 = smov (!%p1098_p12), 112   ;;  %s1595_s8 = smov (!%p1098_p12), 80  }
  0x6b   : > { %s1596_s19 = smov (!%p1098_p12), 64   ;;  %s1597_s6 = smov (!%p1098_p12), 48  }
  0x6c   : > { %s1598_s1 = smov (!%p1098_p12), 32   ;;  %s1599_s5 = smov (!%p1098_p12), 16  }
  0x6e   : > { %v345_v0 = vld [vmem:[#allocation7 + $0x78] sm:$0xff]  ;;  %v344_v1 = vld [vmem:[#allocation7 + $0x70] sm:$0xff]  ;;  %v343_v2 = vld [vmem:[#allocation7 + $0x68] sm:$0xff]  ;;  %vm358_vm0 = vcmask 523264   ;;  %v1592_v17 = vmov 0.0   ;;  %v348_v19 = vlaneseq  ;;  %vm442_vm1 = vcmask 130048  }
  0x6f   : > { %381 = vmatprep.subr.mxu0 %v345_v0  ;;  %1180 = vmatprep.subr.mxu1 %v345_v0  ;;  %v342_v3 = vld [vmem:[#allocation7 + $0x60] sm:$0xff]  ;;  %v341_v4 = vld [vmem:[#allocation7 + $0x58] sm:$0xff]  ;;  %v340_v5 = vld [vmem:[#allocation7 + $0x50] sm:$0xff] }
  0x70   : > { %382 = vmatpush1.msra.mxu0 %v344_v1  ;;  %1188 = vmatpush1.msra.mxu1 %v344_v1  ;;  %v339_v6 = vld [vmem:[#allocation7 + $0x48] sm:$0xff]  ;;  %v338_v7 = vld [vmem:[#allocation7 + $0x40] sm:$0xff]  ;;  %v337_v8 = vld [vmem:[#allocation7 + $0x38] sm:$0xff]  ;;  %v349_v20 = vshrl.u32 %v348_v19, 7 }
  0x71   : > { %383 = vmatprep.subr.mxu0 %v343_v2  ;;  %1181 = vmatprep.subr.mxu1 %v343_v2  ;;  %v336_v9 = vld [vmem:[#allocation7 + $0x30] sm:$0xff]  ;;  %v335_v10 = vld [vmem:[#allocation7 + $0x28] sm:$0xff]  ;;  %v334_v11 = vld [vmem:[#allocation7 + $0x20] sm:$0xff] }
  0x72   : > { %384 = vmatpush1.msra.mxu0 %v342_v3  ;;  %1189 = vmatpush1.msra.mxu1 %v342_v3  ;;  %v333_v12 = vld [vmem:[#allocation7 + $0x18] sm:$0xff]  ;;  %v332_v13 = vld [vmem:[#allocation7 + $0x10] sm:$0xff]  ;;  %v331_v14 = vld [vmem:[#allocation7 + $0x8] sm:$0xff]  ;;  %v350_v21 = vsub.s32 0, %v349_v20  ;;  %v354_v23 = vsub.s32 1, %v349_v20 }
  0x73   : > { %385 = vmatprep.subr.mxu0 %v341_v4  ;;  %1182 = vmatprep.subr.mxu1 %v341_v4  ;;  %v330_v15 = vld [vmem:[#allocation7] sm:$0xff]  ;;  %v329_v18 = vld [vmem:[%s1830_s16 + $0x8] sm:$0xff] }
  0x74   : > { %386 = vmatpush1.msra.mxu0 %v340_v5  ;;  %1190 = vmatpush1.msra.mxu1 %v340_v5  ;;  %v328_v16 = vld [vmem:[%s1830_s16] sm:$0xff] }
  0x75   : > { %387 = vmatprep.subr.mxu0 %v339_v6  ;;  %1183 = vmatprep.subr.mxu1 %v339_v6  ;;  %v346_v22 = vld [vmem:[%s2089_s2] sm:$0x3] }
  0x76   : > { %388 = vmatpush1.msra.mxu0 %v338_v7  ;;  %1191 = vmatpush1.msra.mxu1 %v338_v7  ;;  %v351_v24 = vrot.slane %v346_v22, %v350_v21  ;;  %v355_v25 = vrot.slane %v346_v22, %v354_v23 }
  0x77   : > { %389 = vmatprep.subr.mxu0 %v337_v8  ;;  %1184 = vmatprep.subr.mxu1 %v337_v8 }
  0x78   : > { %390 = vmatpush1.msra.mxu0 %v336_v9  ;;  %1192 = vmatpush1.msra.mxu1 %v336_v9 }
  0x79   : > { %391 = vmatprep.subr.mxu0 %v335_v10  ;;  %1185 = vmatprep.subr.mxu1 %v335_v10 }
  0x7a   : > { %392 = vmatpush1.msra.mxu0 %v334_v11  ;;  %1193 = vmatpush1.msra.mxu1 %v334_v11 }
  0x7b   : > { %393 = vmatprep.subr.mxu0 %v333_v12  ;;  %1186 = vmatprep.subr.mxu1 %v333_v12 }
  0x7c   : > { %394 = vmatpush1.msra.mxu0 %v332_v13  ;;  %1194 = vmatpush1.msra.mxu1 %v332_v13 }
  0x7d   : > { %395 = vmatprep.subr.mxu0 %v331_v14  ;;  %429 = vmatprep.mubr.f32.mxu0 %v1592_v17 }
  0x7e   : > { %396 = vmatpush1.msra.mxu0 %v330_v15  ;;  %1187 = vmatprep.subr.mxu1 %v331_v14 }
  0x7f   : > { %1099 = vmatmul.mubr.msk.f32.vlgmr.msra.gmra.mxu0 %vm358_vm0, %v328_v16  ;;  %1195 = vmatpush1.msra.mxu1 %v330_v15 }
  0x80   : > { %435 = vmatprep.mubr.f32.mxu1 %v1592_v17 }
  0x81   : > { %1100 = vmatmul.mubr.msk.f32.vlgmr.msra.gmra.mxu1 %vm358_vm0, %v329_v18 }
 0x13f   : > { %v431_v26 = vpop.f32.mrf.mxu0 }
 0x140   : > { %v432_v27 = vadd.f32 %v431_v26, %v351_v24 }
 0x141   : > { %v433_v28 = vpop.f32.mrf.mxu0  ;;  %v437_v29 = vpop.f32.mrf.mxu1 }
 0x142   : > { %443 = vst.msk [vmem:[#allocation2] sm:$0xff] %vm442_vm1, %v432_v27  ;;  %v434_v30 = vadd.f32 %v433_v28, %v355_v25  ;;  %v438_v31 = vadd.f32 %v437_v29, %v351_v24  ;;  %456 = vrot.lane.b32.xlu1 %v432_v27, %s1593_s11  ;;  %447 = vrot.lane.b32.xlu0 %v432_v27, %s1594_s21 }
 0x143   : > { %v439_v32 = vpop.f32.mrf.mxu1 }
 0x144   : > { %511 = vst.msk [vmem:[#allocation2 + $0x80] sm:$0xff] %vm442_vm1, %v434_v30  ;;  %444 = vst.msk [vmem:[#allocation2 + $0x8] sm:$0xff] %vm442_vm1, %v438_v31  ;;  %v440_v33 = vadd.f32 %v439_v32, %v355_v25 }
 0x146   : > { %512 = vst.msk [vmem:[#allocation2 + $0x88] sm:$0xff] %vm442_vm1, %v440_v33  ;;  %458 = vrot.lane.b32.xlu1 %v438_v31, %s1593_s11  ;;  %449 = vrot.lane.b32.xlu0 %v438_v31, %s1594_s21 }
 0x14a   : > { %467 = vrot.lane.b32.xlu1 %v438_v31, %s1595_s8  ;;  %465 = vrot.lane.b32.xlu0 %v432_v27, %s1595_s8 }
 0x14e   : > { %476 = vrot.lane.b32.xlu1 %v438_v31, %s1596_s19  ;;  %474 = vrot.lane.b32.xlu0 %v432_v27, %s1596_s19 }
 0x152   : > { %485 = vrot.lane.b32.xlu1 %v438_v31, %s1597_s6  ;;  %483 = vrot.lane.b32.xlu0 %v432_v27, %s1597_s6 }
 0x156   : > { %494 = vrot.lane.b32.xlu1 %v438_v31, %s1598_s1  ;;  %492 = vrot.lane.b32.xlu0 %v432_v27, %s1598_s1 }
 0x15a   : > { %503 = vrot.lane.b32.xlu1 %v438_v31, %s1599_s5  ;;  %501 = vrot.lane.b32.xlu0 %v432_v27, %s1599_s5 }
 0x15e   : > { %517 = vrot.lane.b32.xlu1 %v440_v33, %s1594_s21  ;;  %515 = vrot.lane.b32.xlu0 %v434_v30, %s1594_s21 }
 0x162   : > { %526 = vrot.lane.b32.xlu1 %v440_v33, %s1593_s11  ;;  %524 = vrot.lane.b32.xlu0 %v434_v30, %s1593_s11 }
 0x166   : > { %535 = vrot.lane.b32.xlu1 %v440_v33, %s1595_s8  ;;  %533 = vrot.lane.b32.xlu0 %v434_v30, %s1595_s8 }
 0x1b4   : > { %v457_v34 = vpop.permute.xlu1 %456  ;;  %v448_v35 = vpop.permute.xlu0 %447 }
 0x1b5   : > { %463 = vst.msk [vmem:[#allocation2 + $0x20] sm:$0xff] %vm442_vm1, %v457_v34  ;;  %454 = vst.msk [vmem:[#allocation2 + $0x10] sm:$0xff] %vm442_vm1, %v448_v35 }
 0x1b8   : > { %v459_v36 = vpop.permute.xlu1 %458  ;;  %v450_v37 = vpop.permute.xlu0 %449 }
 0x1b9   : > { %464 = vst.msk [vmem:[#allocation2 + $0x28] sm:$0xff] %vm442_vm1, %v459_v36  ;;  %455 = vst.msk [vmem:[#allocation2 + $0x18] sm:$0xff] %vm442_vm1, %v450_v37 }
 0x1bc   : > { %v468_v38 = vpop.permute.xlu1 %467  ;;  %v466_v39 = vpop.permute.xlu0 %465 }
 0x1bd   : > { %473 = vst.msk [vmem:[#allocation2 + $0x38] sm:$0xff] %vm442_vm1, %v468_v38  ;;  %472 = vst.msk [vmem:[#allocation2 + $0x30] sm:$0xff] %vm442_vm1, %v466_v39 }
 0x1c0   : > { %v477_v40 = vpop.permute.xlu1 %476  ;;  %v475_v41 = vpop.permute.xlu0 %474 }
 0x1c1   : > { %482 = vst.msk [vmem:[#allocation2 + $0x48] sm:$0xff] %vm442_vm1, %v477_v40  ;;  %481 = vst.msk [vmem:[#allocation2 + $0x40] sm:$0xff] %vm442_vm1, %v475_v41 }
 0x1c4   : > { %v486_v42 = vpop.permute.xlu1 %485  ;;  %v484_v43 = vpop.permute.xlu0 %483 }
 0x1c5   : > { %491 = vst.msk [vmem:[#allocation2 + $0x58] sm:$0xff] %vm442_vm1, %v486_v42  ;;  %490 = vst.msk [vmem:[#allocation2 + $0x50] sm:$0xff] %vm442_vm1, %v484_v43 }
 0x1c8   : > { %v495_v44 = vpop.permute.xlu1 %494  ;;  %v493_v45 = vpop.permute.xlu0 %492 }
 0x1c9   : > { %500 = vst.msk [vmem:[#allocation2 + $0x68] sm:$0xff] %vm442_vm1, %v495_v44  ;;  %499 = vst.msk [vmem:[#allocation2 + $0x60] sm:$0xff] %vm442_vm1, %v493_v45 }
 0x1cc   : > { %v504_v46 = vpop.permute.xlu1 %503  ;;  %v502_v47 = vpop.permute.xlu0 %501 }
 0x1cd   : > { %509 = vst.msk [vmem:[#allocation2 + $0x78] sm:$0xff] %vm442_vm1, %v504_v46  ;;  %508 = vst.msk [vmem:[#allocation2 + $0x70] sm:$0xff] %vm442_vm1, %v502_v47 }
 0x1d0   : > { %v518_v48 = vpop.permute.xlu1 %517  ;;  %v516_v49 = vpop.permute.xlu0 %515 }
 0x1d1   : > { %523 = vst.msk [vmem:[#allocation2 + $0x98] sm:$0xff] %vm442_vm1, %v518_v48  ;;  %522 = vst.msk [vmem:[#allocation2 + $0x90] sm:$0xff] %vm442_vm1, %v516_v49 }
 0x1d4   : > { %v527_v50 = vpop.permute.xlu1 %526  ;;  %v525_v51 = vpop.permute.xlu0 %524 }
 0x1d5   : > { %532 = vst.msk [vmem:[#allocation2 + $0xa8] sm:$0xff] %vm442_vm1, %v527_v50  ;;  %531 = vst.msk [vmem:[#allocation2 + $0xa0] sm:$0xff] %vm442_vm1, %v525_v51 }
 0x1d8   : > { %v536_v52 = vpop.permute.xlu1 %535  ;;  %v534_v53 = vpop.permute.xlu0 %533 }
 0x1d9   : > { %541 = vst.msk [vmem:[#allocation2 + $0xb8] sm:$0xff] %vm442_vm1, %v536_v52  ;;  %540 = vst.msk [vmem:[#allocation2 + $0xb0] sm:$0xff] %vm442_vm1, %v534_v53 }
 0x1da PF: > { %s1101_s24 = sshll.u32 %s1567_s27, 4  ;;  %vm556_vm2 = vcmask 130048   ;;  %p1114_p2 = scmp.ne.s32.totalorder %s1567_s27, 3 }
 0x1db   : > { %s1880_s9 = scalar_lea.vmem [#allocation2], %s1101_s24  ;;  %s749_s14 = scalar_lea.vmem [#allocation3], %s1101_s24 }
 0x1dc   : > { %s1600_s16 = smov (!%p1114_p2), 32   ;;  %s1601_s15 = smov (!%p1114_p2), 16  }
 0x1dd   : > { %s1602_s10 = smov (!%p1114_p2), 48   ;;  %s2090_s4 = sld [smem:[#allocation30_spill]] (!%p1114_p2) }
 0x1e0   : > { %v1104_v54 = vld [vmem:[%s1880_s9 + $0x48] sm:$0xff]  ;;  %v1103_v55 = vld [vmem:[%s1880_s9 + $0x40] sm:$0xff] }
 0x1e1   : > { %v544_v56 = vld [vmem:[%s1880_s9] sm:$0xff]  ;;  %1147 = vmatprep.subr.msk.mxu0 %vm556_vm2, %v1104_v54  ;;  %v545_v57 = vld [vmem:[%s1880_s9 + $0x8] sm:$0xff] }
 0x1e2   : > { %1151 = vmatprep.mubr.msk.f32.mxu0 %vm556_vm2, %v544_v56  ;;  %1148 = vmatpush3.xpose.msk.msra.mxu0 %vm556_vm2, %v1104_v54  ;;  %v1107_v8 = vld [vmem:[%s1880_s9 + $0x88] sm:$0xff]  ;;  %v1106_v9 = vld [vmem:[%s1880_s9 + $0x80] sm:$0xff] }
 0x1e3   : > { %1149 = vmatprep.subr.msk.mxu0 %vm556_vm2, %v1103_v55  ;;  %1154 = vmatprep.subr.mxu1 %v1107_v8 }
 0x1e4   : > { %1155 = vmatpush3.msra.mxu1 %v1107_v8 }
 0x1e5   : > { %1156 = vmatprep.subr.mxu1 %v1106_v9 }
 0x1e6   : > { %1150 = vmatpush3.xpose.msk.msra.mxu0 %vm556_vm2, %v1103_v55  ;;  %1157 = vmatpush3.msra.mxu1 %v1106_v9 }
 0x1e9   : > { %1152 = vmatmul.mubr.msk.f32.vlgmr.msra.gmra.mxu0 %vm556_vm2, %v545_v57 }
 0x2a9   : > { %v1153_v58 = vpop.f32.mrf.mxu0 }
 0x2aa   : > { %v647_v61 = vsel %vm556_vm2, %v1153_v58, -inf }
 0x2ab   : > { %v635_v59 = vpop.f32.mrf.mxu0 }
 0x2ac   : > { %v644_v60 = vsel %vm556_vm2, %v635_v59, -inf }
 0x2ad   : > { %645 = vmax.xlane.f32.xlu0 %v644_v60 }
 0x2b1   : > { %648 = vmax.xlane.f32.xlu0 %v647_v61 }
 0x336   : > { %v646_v62 = vpop.xlane.xlu0 %645 }
 0x337   : > { %v650_v63 = vsub.f32 %v635_v59, %v646_v62 }
 0x339   : > { %v652_v0 = vmul.f32 1.442695, %v650_v63 }
 0x33a   : > { %v649_v1 = vpop.xlane.xlu0 %648 }
 0x33b   : > { %1341 = vpow2.f32 %v652_v0  ;;  %v651_v2 = vsub.f32 %v1153_v58, %v649_v1 }
 0x33d   : > { %v654_v3 = vmul.f32 1.442695, %v651_v2 }
 0x33f   : > { %1343 = vpow2.f32 %v654_v3 }
 0x348   : > { %v1342_v4 = vpop.eup %1341 }
 0x349   : > { %v656_v5 = vsel %vm556_vm2, %v1342_v4, 0.0 }
 0x34a   : > { %657 = vadd.xlane.f32.xlu1 %v656_v5 }
 0x34c   : > { %v1344_v6 = vpop.eup %1343 }
 0x34d   : > { %v659_v7 = vsel %vm556_vm2, %v1344_v6, 0.0 }
 0x34e   : > { %660 = vadd.xlane.f32.xlu1 %v659_v7 }
 0x3d3   : > { %v658_v10 = vpop.xlane.xlu1 %657 }
 0x3d4   : > { %1345 = vrcp.f32 %v658_v10 }
 0x3d7   : > { %v661_v11 = vpop.xlane.xlu1 %660 }
 0x3d8   : > { %1347 = vrcp.f32 %v661_v11 }
 0x3e1   : > { %v1346_v12 = vpop.eup %1345 }
 0x3e2   : > { %v664_v13 = vmul.f32 %v1346_v12, %v1342_v4 }
 0x3e4   : > { %666 = vst.msk [vmem:[%s1845_s20] sm:$0xff] %vm556_vm2, %v664_v13  ;;  %1158 = vmatprep.mubr.msk.f32.mxu1 %vm556_vm2, %v664_v13 }
 0x3e5   : > { %v1348_v14 = vpop.eup %1347 }
 0x3e6   : > { %v665_v15 = vmul.f32 %v1348_v14, %v1344_v6 }
 0x3e8   : > { %667 = vst.msk [vmem:[%s1845_s20 + $0x8] sm:$0xff] %vm556_vm2, %v665_v15  ;;  %1159 = vmatmul.mubr.msk.f32.vlgmr.msra.gmra.mxu1 %vm556_vm2, %v665_v15 }
 0x4a7   : > { %755 = sbr.rel (%p1114_p2) target bundleno = 1526 (0x5f6), region = 60 }
 0x4a8   : > { %v1160_v16 = vpop.f32.mrf.mxu1 }
 0x4a9   : > { %751 = vst.msk [vmem:[%s749_s14 + $0x8] sm:$0xff] %vm556_vm2, %v1160_v16 }
 0x4aa   : > { %v740_v17 = vpop.f32.mrf.mxu1 }
 0x4ab   : > { %750 = vst.msk [vmem:[%s749_s14] sm:$0xff] %vm556_vm2, %v740_v17 }
 0x4ac   : > { %v806_v22 = vld [vmem:[#allocation9 + $0x38] sm:$0xff]  ;;  %v805_v23 = vld [vmem:[#allocation9 + $0x30] sm:$0xff]  ;;  %v804_v24 = vld [vmem:[#allocation9 + $0x28] sm:$0xff]  ;;  %vm793_vm3 = vcmask 261120   ;;  %vm796_vm4 = vcmask 392192   ;;  %vm814_vm5 = vcmask 523264  }
 0x4ad   : > { %1161 = vmatprep.subr.mxu0 %v806_v22  ;;  %v803_v27 = vld [vmem:[#allocation9 + $0x20] sm:$0xff]  ;;  %v802_v28 = vld [vmem:[#allocation9 + $0x18] sm:$0xff]  ;;  %v801_v29 = vld [vmem:[#allocation9 + $0x10] sm:$0xff] }
 0x4ae   : > { %1162 = vmatpush3.msra.mxu0 %v806_v22  ;;  %v800_v30 = vld [vmem:[#allocation9 + $0x8] sm:$0xff]  ;;  %v799_v31 = vld [vmem:[#allocation9] sm:$0xff] }
 0x4af   : > { %1163 = vmatprep.subr.mxu0 %v805_v23  ;;  %v1115_v46 = vld [vmem:[%s2090_s4] ss:$0 sm:$0xff] }
 0x4b0   : > { %1164 = vmatpush3.msra.mxu0 %v805_v23 }
 0x4b1   : > { %1165 = vmatprep.subr.mxu0 %v804_v24 }
 0x4b2   : > { %v762_v18 = vld [vmem:[#allocation3 + $0x20] sm:$0xff]  ;;  %v759_v19 = vld [vmem:[#allocation3 + $0x10] sm:$0xff]  ;;  %v763_v20 = vld [vmem:[#allocation3 + $0x28] sm:$0xff]  ;;  %1166 = vmatpush3.msra.mxu0 %v804_v24 }
 0x4b3   : > { %777 = vrot.lane.b32.xlu1 %v762_v18, %s1600_s16  ;;  %769 = vrot.lane.b32.xlu0 %v759_v19, %s1601_s15  ;;  %v760_v21 = vld [vmem:[#allocation3 + $0x18] sm:$0xff]  ;;  %v765_v26 = vld [vmem:[#allocation3 + $0x30] sm:$0xff]  ;;  %v756_v34 = vld [vmem:[#allocation3] sm:$0xff] }
 0x4b4   : > { %v766_v25 = vld [vmem:[#allocation3 + $0x38] sm:$0xff]  ;;  %1167 = vmatprep.subr.mxu0 %v803_v27  ;;  %v757_v35 = vld [vmem:[#allocation3 + $0x8] sm:$0xff] }
 0x4b5   : > { %1168 = vmatpush3.msra.mxu0 %v803_v27 }
 0x4b6   : > { %1169 = vmatprep.subr.mxu0 %v802_v28 }
 0x4b7   : > { %779 = vrot.lane.b32.xlu1 %v763_v20, %s1600_s16  ;;  %771 = vrot.lane.b32.xlu0 %v760_v21, %s1601_s15 }
 0x4b8   : > { %1170 = vmatpush3.msra.mxu0 %v802_v28 }
 0x4b9   : > { %1171 = vmatprep.subr.mxu0 %v801_v29 }
 0x4ba   : > { %1172 = vmatpush3.msra.mxu0 %v801_v29 }
 0x4bb   : > { %787 = vrot.lane.b32.xlu1 %v766_v25, %s1602_s10  ;;  %785 = vrot.lane.b32.xlu0 %v765_v26, %s1602_s10 }
 0x4bc   : > { %1173 = vmatprep.subr.mxu0 %v800_v30 }
 0x4bd   : > { %1174 = vmatpush3.msra.mxu0 %v800_v30 }
 0x4be   : > { %1175 = vmatprep.subr.mxu0 %v799_v31 }
 0x4bf   : > { %1176 = vmatpush3.msra.mxu0 %v799_v31 }
 0x525   : > { %v778_v32 = vpop.permute.xlu1 %777  ;;  %v770_v33 = vpop.permute.xlu0 %769 }
 0x526   : > { %v791_v38 = vsel %vm556_vm2, %v756_v34, %v770_v33 }
 0x527   : > { %v794_v43 = vsel %vm793_vm3, %v791_v38, %v778_v32 }
 0x529   : > { %v780_v36 = vpop.permute.xlu1 %779  ;;  %v772_v37 = vpop.permute.xlu0 %771 }
 0x52a   : > { %v792_v39 = vsel %vm556_vm2, %v757_v35, %v772_v37 }
 0x52b   : > { %v795_v40 = vsel %vm793_vm3, %v792_v39, %v780_v36 }
 0x52d   : > { %v788_v41 = vpop.permute.xlu1 %787  ;;  %v786_v42 = vpop.permute.xlu0 %785 }
 0x52e   : > { %v798_v44 = vsel %vm796_vm4, %v795_v40, %v788_v41  ;;  %v797_v45 = vsel %vm796_vm4, %v794_v43, %v786_v42 }
 0x52f   : > { %1177 = vmatprep.mubr.msk.f32.mxu0 %vm814_vm5, %v797_v45 }
 0x530   : > { %1178 = vmatmul.mubr.msk.f32.vlgmr.msra.gmra.mxu0 %vm814_vm5, %v798_v44 }
 0x5f0   : > { %v1179_v47 = vpop.f32.mrf.mxu0 }
 0x5f1   : > { %v893_v48 = vadd.f32 %v1179_v47, %v1115_v46 }
 0x5f2   : > { %v887_v49 = vpop.f32.mrf.mxu0 }
 0x5f3   : > { %897 = vst.msk [vmem:[%s1843_s17 + $0x8] sm:$0xff] %vm814_vm5, %v893_v48  ;;  %v888_v50 = vadd.f32 %v1115_v46, %v887_v49 }
 0x5f5   : > { %896 = vst.msk [vmem:[%s1843_s17] sm:$0xff] %vm814_vm5, %v888_v50 }
 0x5f6 PF: > { %s2091_s21 = sld [smem:[#allocation19_spill]]  ;;  %s917_s9 = sshll.u32 %s1843_s17, 4  ;;  %s1923_s9 = int_to_ptr.vmem [resolvable:$true] %s917_s9 }
 0x5f7   : > { %s2093_s5 = sld [smem:[#allocation31_spill]]  ;;  %s899_s14 = scalar_lea.sflag [#allocation6], %s1826_s13 }
 0x5f8   : > { %s1429_s16 = scalar_lea.vmem %s1923_s9, 256  ;;  %s1603_s15 = smov [#allocation10]  }
 0x5f9   : > { %p1430_p6 = scmp.ne.s32.totalorder %s1923_s9, %s1429_s16  ;;  %s1433_s10 = sshll.u32 %s1603_s15, 4  ;;  %s1434_s10 = int_to_ptr.vmem [resolvable:$false] %s1433_s10 }
 0x5fa   : > { %s1435_s12 = scalar_lea.vmem %s1434_s10, 512  ;;  %p1436_p5 = scmp.lt.s32.totalorder %s1923_s9, %s1434_s10 }
 0x5fb   : > { %p1431_p7 = pnand %p1430_p6, %p1780_p3  ;;  %p1437_p1 = scmp.lt.s32.totalorder %s1435_s12, %s1429_s16 }
 0x5fc   : > { %s1128_s19 = sshll.u32 %s2091_s21, 8 }
 0x5fd   : > { %s1920_s24 = scalar_lea.hbm %s2093_s5, %s1128_s19  ;;  %p1432_p11 = pneg %p1431_p7 }
 0x5fe   : > { %p1438_p4 = por %p1437_p1, %p1436_p5 }
 0x600   : > { %p1439_p9 = pnand %p1438_p4, %p1432_p11 }
 0x602   : > { %1442 = shalt.err (!%p1439_p9)
}
 0x603   : > { %s1443_s17 = scalar_lea.hbm %s1920_s24, 256  ;;  %s1447_s6 = scalar_lea.hbm %s2093_s5, 512 }
 0x604   : > { %p1444_p0 = scmp.ne.s32.totalorder %s1920_s24, %s1443_s17  ;;  %p1448_p13 = scmp.lt.s32.totalorder %s1920_s24, %s2093_s5 }
 0x605   : > { %p1449_p12 = scmp.lt.s32.totalorder %s1447_s6, %s1443_s17 }
 0x606   : > { %p1445_p8 = pnand %p1444_p0, %p1780_p3 }
 0x607   : > { %p1450_p2 = por %p1449_p12, %p1448_p13 }
 0x608   : > { %p1446_p10 = pneg %p1445_p8 }
 0x60a   : > { %p1451_p6 = pnand %p1450_p2, %p1446_p10 }
 0x60c   : > { %1454 = shalt.err (!%p1451_p6)
}
 0x60d   : > { %s1604_s16 = smov 128   ;;  %s2094_s10 = sld [smem:[#allocation22_spill]] }
 0x60e   : > { %s1605_s12 = smov 8   ;;  %s1122_s17 = sshll.u32 %s1567_s27, 1 }
 0x60f   : > { %1206 = dma.vmem_to_hbm [thread:$0]  (%p1780_p3), %s1923_s9, 256, %s1920_s24, %s899_s14, %s1604_s16, %s1604_s16, %s1605_s12  }
 0x610   : > { %s1123_s11 = sshll.u32 %s2091_s21, 3  ;;  %s935_s6 = sshll.u32 %s1845_s20, 4  ;;  %s1954_s6 = int_to_ptr.vmem [resolvable:$true] %s935_s6 }
 0x611   : > { %s932_s19 = sadd.s32 %s1123_s11, %s1122_s17  ;;  %s2095_s0 = sld [smem:[#allocation32_spill]] }
 0x612   : > { %s1124_s1 = sshll.u32 %s932_s19, 7  ;;  %s2096_s8 = sand.u32 1, %s1547_s22  }
 0x613   : > { %s904_s4 = scalar_lea.sflag [#allocation12], %s2096_s8  ;;  %s1455_s5 = scalar_lea.vmem %s1954_s6, 256 }
 0x614   : > { %p1456_p7 = scmp.ne.s32.totalorder %s1954_s6, %s1455_s5  ;;  %p2097_p3 = scmp.ne.s32.totalorder %s2094_s10, 0 }
 0x615   : > { %s1606_s27 = smov [#allocation11]  }
 0x616   : > { %p1457_p11 = pnand %p1456_p7, %p2097_p3  ;;  %s1459_s13 = sshll.u32 %s1606_s27, 4  ;;  %s1460_s13 = int_to_ptr.vmem [resolvable:$false] %s1459_s13 }
 0x617   : > { %s1959_s2 = scalar_lea.hbm %s2095_s0, %s1124_s1  ;;  %s1461_s20 = scalar_lea.vmem %s1460_s13, 512 }
 0x618   : > { %p1458_p5 = pneg %p1457_p11  ;;  %p1462_p1 = scmp.lt.s32.totalorder %s1954_s6, %s1460_s13 }
 0x619   : > { %p1463_p4 = scmp.lt.s32.totalorder %s1461_s20, %s1455_s5 }
 0x61b   : > { %p1464_p9 = por %p1463_p4, %p1462_p1 }
 0x61d   : > { %p1465_p0 = pnand %p1464_p9, %p1458_p5 }
 0x61f   : > { %1468 = shalt.err (!%p1465_p0)
}
 0x620   : > { %s1469_s28 = scalar_lea.hbm %s1959_s2, 256  ;;  %s1473_s9 = scalar_lea.hbm %s2095_s0, 2048 }
 0x621   : > { %p1470_p8 = scmp.ne.s32.totalorder %s1959_s2, %s1469_s28  ;;  %p1474_p12 = scmp.lt.s32.totalorder %s1959_s2, %s2095_s0 }
 0x622   : > { %p1475_p2 = scmp.lt.s32.totalorder %s1473_s9, %s1469_s28 }
 0x623   : > { %p1471_p10 = pnand %p1470_p8, %p2097_p3 }
 0x624   : > { %p1476_p6 = por %p1475_p2, %p1474_p12 }
 0x625   : > { %p1472_p13 = pneg %p1471_p10 }
 0x627   : > { %p1477_p7 = pnand %p1476_p6, %p1472_p13 }
 0x629   : > { %1480 = shalt.err (!%p1477_p7)
}
 0x62a   : > { %1207 = dma.vmem_to_hbm [thread:$0]  (%p2097_p3), %s1954_s6, 256, %s1959_s2, %s904_s4, %s1604_s16, %s1604_s16, %s1605_s12  }
 0x62b PF: > { %s2098_s5 = sld [smem:[#allocation18_spill]]  ;;  %p1233_p11 = scmp.ge.s32.totalorder %s1583_s7, 2 }
 0x62c   : > { %s2099_s11 = sld [smem:[#allocation21_spill]] }
 0x631   : > { %s950_s19 = sand.u32 1, %s2098_s5  }
 0x632   : > { %p2100_p5 = scmp.ne.s32.totalorder %s2099_s11, 0  ;;  %s951_s1 = scalar_lea.sflag [#allocation6], %s950_s19 }
 0x634   : > { %p1222_p1 = pnand %p1233_p11, %p2100_p5 }
 0x636   : > { %p1223_p4 = pneg %p1222_p1 }
 0x638   : > { %1534 = dma.done.wait (%p1223_p4), %s951_s1, 256  }
 0x639   : > { %1536 = vsyncadd (%p1223_p4), %s951_s1, 4294967040  ;;  %s2101_s15 = sld [smem:[#allocation17_spill]] }
 0x63a   : > { %s2102_s10 = sld [smem:[#allocation23_spill]] }
 0x63f   : > { %s959_s8 = sand.u32 1, %s2101_s15  }
 0x640   : > { %p2103_p9 = scmp.ne.s32.totalorder %s2102_s10, 0  ;;  %s960_s27 = scalar_lea.sflag [#allocation12], %s959_s8 }
 0x642   : > { %p1225_p0 = pnand %p1233_p11, %p2103_p9 }
 0x644   : > { %p1226_p8 = pneg %p1225_p0 }
 0x646   : > { %1538 = dma.done.wait (%p1226_p8), %s960_s27, 256  }
 0x647   : > { %1540 = vsyncadd (%p1226_p8), %s960_s27, 4294967040  ;;  %s27_s7 = sadd.s32 1, %s1583_s7   ;;  %s2104_s27 = sld [smem:[#allocation20_spill]] }
 0x648   : > { %p24_p3 = scmp.ge.s32.totalorder %s27_s7, 10   ;;  %s2105_s2 = sld [smem:[#allocation24_spill]] }
 0x649   : > { %s2106_s21 = smov %s1547_s22  ;;  %s2107_s22 = smov %s1551_s23 }
 0x64a   : > { %s2108_s23 = smov %s1803_s29  ;;  %s2109_s24 = smov %s1559_s25 }
 0x64b   : > { %s2110_s25 = smov %s1563_s26  ;;  %s2111_s26 = smov %s1798_s3 }
 0x64c   : > { %s2112_s28 = smov %s1579_s30  ;;  %s2114_s30 = smov %s2120_s18 }
 0x64d   :  { %26 = sbr.rel (!%p24_p3) target bundleno = 20 (0x14), region = 136 }
 0x64e   : > { %s2113_s29 = smov %s2105_s2 }
 0x652   :  { %965 = vsyncpa [#allocation5], 1 }
 0x653   :  { %967 = vsyncpa [#allocation5 + $0x1], 1 }
 0x654   :  { %968 = vsyncpa [#allocation8], 1 }
 0x655   :  { %969 = vsyncpa [#allocation6], 1 }
 0x656   :  { %971 = vsyncpa [#allocation6 + $0x1], 1 }
 0x657   :  { %972 = vsyncpa [#allocation12], 1 }
 0x658   :  { %974 = vsyncpa [#allocation12 + $0x1], 1 }

</bundles_post_ra>
